<compile_context>
chip_gen: v5e
topology: v5e:2x2
jax: 0.10.0
libtpu: 0.0.40
codegen_flags: <defaults>
</compile_context>

<pallas_src>
import functools

import jax
import jax.numpy as jnp
from jax.experimental import pallas as pl
from jax.experimental.pallas import tpu as pltpu


def _mhop_kernel(z0_ref, l_ref, waug_ref, wpad_ref, ea_ref, out_ref,
                 *, k, n_head, bs, n, h, eps):
    ha = h + 1                       # per-head column block: [h hidden | 1 fused degree]
    rph = bs * n                     # rows per head block (sublane-aligned)
    ea = ea_ref[...]                 # (bs*n, 1)
    z = z0_ref[...]                  # (n_head*bs*n, ha), rows ordered (head, batch, node)

    hop_out = []
    for t in range(k):               # hops fully unrolled (k is small & static)
        # trans_attn head mixing + uni_attn scaling + adjacency propagation, all
        # pre-folded into L[t]: ONE (128,128)@(128,33) matmul, 128-deep contraction.
        y = jnp.dot(l_ref[t], z, preferred_element_type=jnp.float32)

        # per-head W[t] (identity on the fused degree column), applied on
        # sublane-aligned 32-row head blocks.
        heads = [jnp.dot(y[j * rph:(j + 1) * rph, :], waug_ref[t, j],
                         preferred_element_type=jnp.float32)
                 for j in range(n_head)]

        # head aggregation: sum full (bs*n, ha) tiles first, slice the degree col once
        z_agg = heads[0]
        for j in range(1, n_head):
            z_agg = z_agg + heads[j]

        # hop output: W_pad (zero row kills the degree column), end_attn, normalize
        zt = jnp.dot(z_agg, wpad_ref[t], preferred_element_type=jnp.float32) * ea  # (32,h)
        dt = z_agg[:, h:ha] * ea + eps                                              # (32,1)
        r = pl.reciprocal(dt, approx=True)       # EUP slot
        r = r * (2.0 - dt * r)                   # one Newton step on the VPU (~exact f32)
        hop_out.append(zt * r)

        if t + 1 < k:                # carry full per-head state (row-wise, sublane-aligned)
            z = jnp.concatenate(heads, axis=0)

    # single lane-dense store: lanes ordered (batch, hop, hidden) -> (n, bs*k*h)
    pieces = [hop_out[t][b * n:(b + 1) * n, :] for b in range(bs) for t in range(k)]
    out_ref[...] = jnp.concatenate(pieces, axis=1).astype(out_ref.dtype)


def pack_weights(w_vs, *, k, n_head):
    """Weight-only packing.  Run once per weight update, not per forward call."""
    kk, nh1, h, _ = w_vs.shape
    assert kk == k and nh1 == n_head + 1
    ha = h + 1
    f32 = jnp.float32
    W = w_vs[:, :-1].astype(f32)                       # (k, n_head, h, h)
    Wi = w_vs[:, -1].astype(f32)                       # (k, h, h)

    # augmented per-head weight block_diag(W[t,j], [[1]]) so the degree column rides along
    W_aug = jnp.zeros((k, n_head, ha, ha), f32)
    W_aug = W_aug.at[:, :, :h, :h].set(W)
    W_aug = W_aug.at[:, :, h, h].set(1.0)

    # W_pad chain, padded with a zero degree row -> (k, ha, h)
    pads = [jnp.eye(h, dtype=f32)]
    for t in range(k - 1):
        pads = [Wi[k - 1 - t] @ pads[0]] + pads
    W_pad = jnp.stack(pads, axis=0)                    # (k, h, h)
    W_pad_aug = jnp.concatenate([W_pad, jnp.zeros((k, 1, h), f32)], axis=1)
    return W_aug, W_pad_aug


def multihop_forward(X, A, start_attn, end_attn, uni_attn, trans_attn, packed_w,
                     *, k, n_head, eps=1e-20):
    bs, n, h = X.shape
    ha = h + 1
    R = n_head * bs * n
    f32 = jnp.float32
    W_aug, W_pad_aug = packed_w

    # ---- per-example packing (rows laid out as (head, batch, node)) ----
    Au = A.astype(f32) * uni_attn.astype(f32)[:, :, None, None]   # (bs, nh, n, n)
    I_b = jnp.eye(bs, dtype=f32)
    I_j = jnp.eye(n_head, dtype=f32)
    # hop 0: adjacency * uni, block-diagonal over (head, batch)
    L0 = jnp.einsum('bjpq,ji,bc->jbpicq', Au, I_j, I_b).reshape(R, R)
    Ls = [L0]
    if k > 1:
        # hops >= 1: additionally fold the trans_attn head mixing into the left matrix
        L1 = jnp.einsum('bjpq,bij,bc->jbpicq', Au, trans_attn.astype(f32),
                        I_b).reshape(R, R)
        Ls += [L1] * (k - 1)
    L_all = jnp.stack(Ls, axis=0)                      # (k, R, R)

    # initial per-head state: [X*start_attn | start_attn], identical for every head
    sa = start_attn.astype(f32)[:, :, None]            # (bs, n, 1)
    z0 = jnp.concatenate([X.astype(f32) * sa, sa], axis=-1).reshape(1, bs * n, ha)
    Z0 = jnp.tile(z0, (n_head, 1, 1)).reshape(R, ha)

    ea = end_attn.astype(f32).reshape(bs * n, 1)

    kernel = functools.partial(_mhop_kernel, k=k, n_head=n_head, bs=bs, n=n, h=h, eps=eps)

    out = pl.pallas_call(
        kernel,
        out_shape=jax.ShapeDtypeStruct((n, bs * k * h), X.dtype),
        grid=(1,),                                     # single invocation, VMEM-resident
        in_specs=[
            pl.BlockSpec((R, ha), lambda i: (0, 0)),
            pl.BlockSpec((k, R, R), lambda i: (0, 0, 0)),
            pl.BlockSpec((k, n_head, ha, ha), lambda i: (0, 0, 0, 0)),
            pl.BlockSpec((k, ha, h), lambda i: (0, 0, 0)),
            pl.BlockSpec((bs * n, 1), lambda i: (0, 0)),
        ],
        out_specs=pl.BlockSpec((n, bs * k * h), lambda i: (0, 0)),
        compiler_params=pltpu.CompilerParams(dimension_semantics=("arbitrary",)),
    )(Z0, L_all, W_aug, W_pad_aug, ea)

    # unpack the lane-dense (n, bs*k*h) result back to k tensors of (bs, n, h)
    out = jnp.transpose(out.reshape(n, bs, k, h), (1, 2, 0, 3))   # (bs, k, n, h)
    return [out[:, t] for t in range(k)]


def reference_forward(X, A, start_attn, end_attn, uni_attn, trans_attn, w_vs,
                      *, k, n_head, eps=1e-20):
    """Direct jnp port of the PyTorch forward (for correctness checking)."""
    bs, n, h = X.shape
    W = w_vs[:, :-1]
    Wi = w_vs[:, -1]
    pads = [jnp.eye(h, dtype=w_vs.dtype)]
    for t in range(k - 1):
        pads = [Wi[k - 1 - t] @ pads[0]] + pads
    A_ = A.reshape(bs * n_head, n, n)
    uni = uni_attn.reshape(bs * n_head)

    Z_all = []
    Z = X * start_attn[:, :, None]
    for t in range(k):
        if t == 0:
            Z = jnp.broadcast_to(Z[..., None], (bs, n, h, n_head))
        else:
            Z = jnp.transpose(Z, (0, 2, 3, 1)).reshape(bs, n * h, n_head)
            Z = jnp.einsum('bxi,bij->bxj', Z, trans_attn).reshape(bs, n, h, n_head)
        Z = jnp.transpose(Z, (3, 0, 1, 2)).reshape(n_head, bs * n, h)
        Z = jnp.einsum('ixh,ihg->ixg', Z, W[t]).reshape(n_head, bs, n, h)
        Z = jnp.transpose(Z, (1, 0, 2, 3)).reshape(bs * n_head, n, h)
        Z = Z * uni[:, None, None]
        Z = jnp.einsum('bpq,bqh->bph', A_, Z)
        Z = Z.reshape(bs, n_head, n, h)
        Zt = Z.sum(1) @ pads[t]
        Zt = Zt * end_attn[:, :, None]
        Z_all.append(Zt)

    D_all = []
    D = start_attn
    for t in range(k):
        if t == 0:
            D = jnp.broadcast_to(D[:, None, :], (bs, n_head, n))
        else:
            D = jnp.einsum('bin,bij->bjn', D, trans_attn)
        Dv = D.reshape(bs * n_head, n, 1) * uni[:, None, None]
        Dv = jnp.einsum('bpq,bqo->bpo', A_, Dv)
        D = Dv.reshape(bs, n_head, n)
        Dt = D.sum(1) * end_attn
        D_all.append(Dt)

    return [Zt / (Dt[:, :, None] + eps) for Zt, Dt in zip(Z_all, D_all)]


if __name__ == "__main__":
    # Module config: MultiHopMessagePassingLayer(k=2, n_head=4, hidden_size=32,
    #                                            diag_decompose=False, n_basis=0)
    k, n_head, h = 2, 4, 32
    bs, n_node = 2, 16
    init_range = 0.01
    eps = 1e-20

    key = jax.random.PRNGKey(0)
    k_w, k_x, k_a, k_sa, k_ea, k_ua, k_ta = jax.random.split(key, 7)

    # Parameter init: w_vs ~ U(-init_range, init_range), shape (k, n_head+1, h, h)
    w_vs = jax.random.uniform(k_w, (k, n_head + 1, h, h), jnp.float32,
                              minval=-init_range, maxval=init_range)

    # Inputs
    X = jax.random.normal(k_x, (bs, n_node, h), jnp.float32)
    A = (jax.random.uniform(k_a, (bs, n_head, n_node, n_node)) < 0.5).astype(jnp.float32)
    start_attn = jax.random.uniform(k_sa, (bs, n_node), jnp.float32)
    end_attn = jax.random.uniform(k_ea, (bs, n_node), jnp.float32)
    uni_attn = jax.random.uniform(k_ua, (bs, n_head), jnp.float32)
    trans_attn = jax.random.uniform(k_ta, (bs, n_head, n_head), jnp.float32)

    # weight-only packing: once per weight update
    packed_w = pack_weights(w_vs, k=k, n_head=n_head)
    packed_w = jax.tree_util.tree_map(jax.block_until_ready, packed_w)

    forward = jax.jit(functools.partial(multihop_forward, k=k, n_head=n_head, eps=eps))
    out_list = forward(X, A, start_attn, end_attn, uni_attn, trans_attn, packed_w)
    out_list = [jax.block_until_ready(o) for o in out_list]

    ref_list = reference_forward(X, A, start_attn, end_attn, uni_attn, trans_attn,
                                 w_vs, k=k, n_head=n_head, eps=eps)

    for t in range(k):
        assert out_list[t].shape == (bs, n_node, h)
        err = jnp.max(jnp.abs(out_list[t] - ref_list[t]))
        scale = jnp.max(jnp.abs(ref_list[t])) + 1e-6
        assert float(err / scale) < 1e-3, f"hop {t}: rel err {float(err / scale)}"

    print("KERNEL_OK")
</pallas_src>

<mosaic_0001>
module attributes {stable_mosaic.version = 11 : i64} {
  func.func @_mhop_kernel(%arg0: i32, %arg1: memref<128x33xf32, #tpu.memory_space<vmem>>, %arg2: memref<2x128x128xf32, #tpu.memory_space<vmem>>, %arg3: memref<2x4x33x33xf32, #tpu.memory_space<vmem>>, %arg4: memref<2x33x32xf32, #tpu.memory_space<vmem>>, %arg5: memref<32x1xf32, #tpu.memory_space<vmem>>, %arg6: memref<16x128xf32, #tpu.memory_space<vmem>>) attributes {dimension_semantics = [#tpu.dimension_semantics<arbitrary>], iteration_bounds = array<i64: 1>, scalar_prefetch = 0 : i64, scratch_operands = 0 : i64, tpu.core_type = #tpu.core_type<tc>, window_params = [{pipeline_mode = #tpu.pipeline_mode<synchronous>, transform_indices = @transform_0, window_bounds = array<i64: 128, 33>}, {pipeline_mode = #tpu.pipeline_mode<synchronous>, transform_indices = @transform_1, window_bounds = array<i64: 2, 128, 128>}, {pipeline_mode = #tpu.pipeline_mode<synchronous>, transform_indices = @transform_2, window_bounds = array<i64: 2, 4, 33, 33>}, {pipeline_mode = #tpu.pipeline_mode<synchronous>, transform_indices = @transform_3, window_bounds = array<i64: 2, 33, 32>}, {pipeline_mode = #tpu.pipeline_mode<synchronous>, transform_indices = @transform_4, window_bounds = array<i64: 32, 1>}, {pipeline_mode = #tpu.pipeline_mode<synchronous>, transform_indices = @transform_5, window_bounds = array<i64: 16, 128>}]} {
    %c0 = arith.constant 0 : index
    %c0_0 = arith.constant 0 : index
    %0 = vector.load %arg5[%c0, %c0_0] : memref<32x1xf32, #tpu.memory_space<vmem>>, vector<32x1xf32>
    %c0_1 = arith.constant 0 : index
    %c0_2 = arith.constant 0 : index
    %1 = vector.load %arg1[%c0_1, %c0_2] : memref<128x33xf32, #tpu.memory_space<vmem>>, vector<128x33xf32>
    %c0_3 = arith.constant 0 : index
    %c0_4 = arith.constant 0 : index
    %c0_5 = arith.constant 0 : index
    %2 = vector.load %arg2[%c0_3, %c0_4, %c0_5] : memref<2x128x128xf32, #tpu.memory_space<vmem>>, vector<1x128x128xf32>
    %3 = vector.shape_cast %2 : vector<1x128x128xf32> to vector<128x128xf32>
    %cst = arith.constant dense<0.000000e+00> : vector<128x33xf32>
    %4 = tpu.matmul %3, %1, %cst {dimension_numbers = #tpu.dot_dimension_numbers<[1], [0], [0], [1], [0, 0, 1, 1], [], []>} : vector<128x128xf32>, vector<128x33xf32>, vector<128x33xf32> -> vector<128x33xf32>
    %5 = vector.extract_strided_slice %4 {offsets = [0, 0], sizes = [32, 33], strides = [1, 1]} : vector<128x33xf32> to vector<32x33xf32>
    %c0_6 = arith.constant 0 : index
    %c0_7 = arith.constant 0 : index
    %c0_8 = arith.constant 0 : index
    %c0_9 = arith.constant 0 : index
    %6 = vector.load %arg3[%c0_6, %c0_7, %c0_8, %c0_9] : memref<2x4x33x33xf32, #tpu.memory_space<vmem>>, vector<1x1x33x33xf32>
    %7 = vector.shape_cast %6 : vector<1x1x33x33xf32> to vector<33x33xf32>
    %cst_10 = arith.constant dense<0.000000e+00> : vector<32x33xf32>
    %8 = tpu.matmul %5, %7, %cst_10 {dimension_numbers = #tpu.dot_dimension_numbers<[1], [0], [0], [1], [0, 0, 1, 1], [], []>} : vector<32x33xf32>, vector<33x33xf32>, vector<32x33xf32> -> vector<32x33xf32>
    %9 = vector.extract_strided_slice %4 {offsets = [32, 0], sizes = [32, 33], strides = [1, 1]} : vector<128x33xf32> to vector<32x33xf32>
    %c0_11 = arith.constant 0 : index
    %c1 = arith.constant 1 : index
    %c0_12 = arith.constant 0 : index
    %c0_13 = arith.constant 0 : index
    %10 = vector.load %arg3[%c0_11, %c1, %c0_12, %c0_13] : memref<2x4x33x33xf32, #tpu.memory_space<vmem>>, vector<1x1x33x33xf32>
    %11 = vector.shape_cast %10 : vector<1x1x33x33xf32> to vector<33x33xf32>
    %cst_14 = arith.constant dense<0.000000e+00> : vector<32x33xf32>
    %12 = tpu.matmul %9, %11, %cst_14 {dimension_numbers = #tpu.dot_dimension_numbers<[1], [0], [0], [1], [0, 0, 1, 1], [], []>} : vector<32x33xf32>, vector<33x33xf32>, vector<32x33xf32> -> vector<32x33xf32>
    %13 = vector.extract_strided_slice %4 {offsets = [64, 0], sizes = [32, 33], strides = [1, 1]} : vector<128x33xf32> to vector<32x33xf32>
    %c0_15 = arith.constant 0 : index
    %c2 = arith.constant 2 : index
    %c0_16 = arith.constant 0 : index
    %c0_17 = arith.constant 0 : index
    %14 = vector.load %arg3[%c0_15, %c2, %c0_16, %c0_17] : memref<2x4x33x33xf32, #tpu.memory_space<vmem>>, vector<1x1x33x33xf32>
    %15 = vector.shape_cast %14 : vector<1x1x33x33xf32> to vector<33x33xf32>
    %cst_18 = arith.constant dense<0.000000e+00> : vector<32x33xf32>
    %16 = tpu.matmul %13, %15, %cst_18 {dimension_numbers = #tpu.dot_dimension_numbers<[1], [0], [0], [1], [0, 0, 1, 1], [], []>} : vector<32x33xf32>, vector<33x33xf32>, vector<32x33xf32> -> vector<32x33xf32>
    %17 = vector.extract_strided_slice %4 {offsets = [96, 0], sizes = [32, 33], strides = [1, 1]} : vector<128x33xf32> to vector<32x33xf32>
    %c0_19 = arith.constant 0 : index
    %c3 = arith.constant 3 : index
    %c0_20 = arith.constant 0 : index
    %c0_21 = arith.constant 0 : index
    %18 = vector.load %arg3[%c0_19, %c3, %c0_20, %c0_21] : memref<2x4x33x33xf32, #tpu.memory_space<vmem>>, vector<1x1x33x33xf32>
    %19 = vector.shape_cast %18 : vector<1x1x33x33xf32> to vector<33x33xf32>
    %cst_22 = arith.constant dense<0.000000e+00> : vector<32x33xf32>
    %20 = tpu.matmul %17, %19, %cst_22 {dimension_numbers = #tpu.dot_dimension_numbers<[1], [0], [0], [1], [0, 0, 1, 1], [], []>} : vector<32x33xf32>, vector<33x33xf32>, vector<32x33xf32> -> vector<32x33xf32>
    %21 = arith.addf %8, %12 : vector<32x33xf32>
    %22 = arith.addf %21, %16 : vector<32x33xf32>
    %23 = arith.addf %22, %20 : vector<32x33xf32>
    %c0_23 = arith.constant 0 : index
    %c0_24 = arith.constant 0 : index
    %c0_25 = arith.constant 0 : index
    %24 = vector.load %arg4[%c0_23, %c0_24, %c0_25] : memref<2x33x32xf32, #tpu.memory_space<vmem>>, vector<1x33x32xf32>
    %25 = vector.shape_cast %24 : vector<1x33x32xf32> to vector<33x32xf32>
    %cst_26 = arith.constant dense<0.000000e+00> : vector<32x32xf32>
    %26 = tpu.matmul %23, %25, %cst_26 {dimension_numbers = #tpu.dot_dimension_numbers<[1], [0], [0], [1], [0, 0, 1, 1], [], []>} : vector<32x33xf32>, vector<33x32xf32>, vector<32x32xf32> -> vector<32x32xf32>
    %27 = vector.broadcast %0 : vector<32x1xf32> to vector<32x32xf32>
    %28 = arith.mulf %26, %27 : vector<32x32xf32>
    %29 = vector.extract_strided_slice %23 {offsets = [0, 32], sizes = [32, 1], strides = [1, 1]} : vector<32x33xf32> to vector<32x1xf32>
    %30 = arith.mulf %29, %0 : vector<32x1xf32>
    %cst_27 = arith.constant 9.99999968E-21 : f32
    %31 = vector.broadcast %cst_27 : f32 to vector<32x1xf32>
    %32 = arith.addf %30, %31 : vector<32x1xf32>
    %33 = tpu.reciprocal %32 {approx = true} : vector<32x1xf32> -> vector<32x1xf32>
    %34 = arith.mulf %32, %33 : vector<32x1xf32>
    %cst_28 = arith.constant 2.000000e+00 : f32
    %35 = vector.broadcast %cst_28 : f32 to vector<32x1xf32>
    %36 = arith.subf %35, %34 : vector<32x1xf32>
    %37 = arith.mulf %33, %36 : vector<32x1xf32>
    %38 = vector.broadcast %37 : vector<32x1xf32> to vector<32x32xf32>
    %39 = arith.mulf %28, %38 : vector<32x32xf32>
    %40 = tpu.concatenate %8, %12, %16, %20 in 0 : vector<32x33xf32>, vector<32x33xf32>, vector<32x33xf32>, vector<32x33xf32> -> vector<128x33xf32>
    %c1_29 = arith.constant 1 : index
    %c0_30 = arith.constant 0 : index
    %c0_31 = arith.constant 0 : index
    %41 = vector.load %arg2[%c1_29, %c0_30, %c0_31] : memref<2x128x128xf32, #tpu.memory_space<vmem>>, vector<1x128x128xf32>
    %42 = vector.shape_cast %41 : vector<1x128x128xf32> to vector<128x128xf32>
    %cst_32 = arith.constant dense<0.000000e+00> : vector<128x33xf32>
    %43 = tpu.matmul %42, %40, %cst_32 {dimension_numbers = #tpu.dot_dimension_numbers<[1], [0], [0], [1], [0, 0, 1, 1], [], []>} : vector<128x128xf32>, vector<128x33xf32>, vector<128x33xf32> -> vector<128x33xf32>
    %44 = vector.extract_strided_slice %43 {offsets = [0, 0], sizes = [32, 33], strides = [1, 1]} : vector<128x33xf32> to vector<32x33xf32>
    %c1_33 = arith.constant 1 : index
    %c0_34 = arith.constant 0 : index
    %c0_35 = arith.constant 0 : index
    %c0_36 = arith.constant 0 : index
    %45 = vector.load %arg3[%c1_33, %c0_34, %c0_35, %c0_36] : memref<2x4x33x33xf32, #tpu.memory_space<vmem>>, vector<1x1x33x33xf32>
    %46 = vector.shape_cast %45 : vector<1x1x33x33xf32> to vector<33x33xf32>
    %cst_37 = arith.constant dense<0.000000e+00> : vector<32x33xf32>
    %47 = tpu.matmul %44, %46, %cst_37 {dimension_numbers = #tpu.dot_dimension_numbers<[1], [0], [0], [1], [0, 0, 1, 1], [], []>} : vector<32x33xf32>, vector<33x33xf32>, vector<32x33xf32> -> vector<32x33xf32>
    %48 = vector.extract_strided_slice %43 {offsets = [32, 0], sizes = [32, 33], strides = [1, 1]} : vector<128x33xf32> to vector<32x33xf32>
    %c1_38 = arith.constant 1 : index
    %c1_39 = arith.constant 1 : index
    %c0_40 = arith.constant 0 : index
    %c0_41 = arith.constant 0 : index
    %49 = vector.load %arg3[%c1_38, %c1_39, %c0_40, %c0_41] : memref<2x4x33x33xf32, #tpu.memory_space<vmem>>, vector<1x1x33x33xf32>
    %50 = vector.shape_cast %49 : vector<1x1x33x33xf32> to vector<33x33xf32>
    %cst_42 = arith.constant dense<0.000000e+00> : vector<32x33xf32>
    %51 = tpu.matmul %48, %50, %cst_42 {dimension_numbers = #tpu.dot_dimension_numbers<[1], [0], [0], [1], [0, 0, 1, 1], [], []>} : vector<32x33xf32>, vector<33x33xf32>, vector<32x33xf32> -> vector<32x33xf32>
    %52 = vector.extract_strided_slice %43 {offsets = [64, 0], sizes = [32, 33], strides = [1, 1]} : vector<128x33xf32> to vector<32x33xf32>
    %c1_43 = arith.constant 1 : index
    %c2_44 = arith.constant 2 : index
    %c0_45 = arith.constant 0 : index
    %c0_46 = arith.constant 0 : index
    %53 = vector.load %arg3[%c1_43, %c2_44, %c0_45, %c0_46] : memref<2x4x33x33xf32, #tpu.memory_space<vmem>>, vector<1x1x33x33xf32>
    %54 = vector.shape_cast %53 : vector<1x1x33x33xf32> to vector<33x33xf32>
    %cst_47 = arith.constant dense<0.000000e+00> : vector<32x33xf32>
    %55 = tpu.matmul %52, %54, %cst_47 {dimension_numbers = #tpu.dot_dimension_numbers<[1], [0], [0], [1], [0, 0, 1, 1], [], []>} : vector<32x33xf32>, vector<33x33xf32>, vector<32x33xf32> -> vector<32x33xf32>
    %56 = vector.extract_strided_slice %43 {offsets = [96, 0], sizes = [32, 33], strides = [1, 1]} : vector<128x33xf32> to vector<32x33xf32>
    %c1_48 = arith.constant 1 : index
    %c3_49 = arith.constant 3 : index
    %c0_50 = arith.constant 0 : index
    %c0_51 = arith.constant 0 : index
    %57 = vector.load %arg3[%c1_48, %c3_49, %c0_50, %c0_51] : memref<2x4x33x33xf32, #tpu.memory_space<vmem>>, vector<1x1x33x33xf32>
    %58 = vector.shape_cast %57 : vector<1x1x33x33xf32> to vector<33x33xf32>
    %cst_52 = arith.constant dense<0.000000e+00> : vector<32x33xf32>
    %59 = tpu.matmul %56, %58, %cst_52 {dimension_numbers = #tpu.dot_dimension_numbers<[1], [0], [0], [1], [0, 0, 1, 1], [], []>} : vector<32x33xf32>, vector<33x33xf32>, vector<32x33xf32> -> vector<32x33xf32>
    %60 = arith.addf %47, %51 : vector<32x33xf32>
    %61 = arith.addf %60, %55 : vector<32x33xf32>
    %62 = arith.addf %61, %59 : vector<32x33xf32>
    %c1_53 = arith.constant 1 : index
    %c0_54 = arith.constant 0 : index
    %c0_55 = arith.constant 0 : index
    %63 = vector.load %arg4[%c1_53, %c0_54, %c0_55] : memref<2x33x32xf32, #tpu.memory_space<vmem>>, vector<1x33x32xf32>
    %64 = vector.shape_cast %63 : vector<1x33x32xf32> to vector<33x32xf32>
    %cst_56 = arith.constant dense<0.000000e+00> : vector<32x32xf32>
    %65 = tpu.matmul %62, %64, %cst_56 {dimension_numbers = #tpu.dot_dimension_numbers<[1], [0], [0], [1], [0, 0, 1, 1], [], []>} : vector<32x33xf32>, vector<33x32xf32>, vector<32x32xf32> -> vector<32x32xf32>
    %66 = vector.broadcast %0 : vector<32x1xf32> to vector<32x32xf32>
    %67 = arith.mulf %65, %66 : vector<32x32xf32>
    %68 = vector.extract_strided_slice %62 {offsets = [0, 32], sizes = [32, 1], strides = [1, 1]} : vector<32x33xf32> to vector<32x1xf32>
    %69 = arith.mulf %68, %0 : vector<32x1xf32>
    %cst_57 = arith.constant 9.99999968E-21 : f32
    %70 = vector.broadcast %cst_57 : f32 to vector<32x1xf32>
    %71 = arith.addf %69, %70 : vector<32x1xf32>
    %72 = tpu.reciprocal %71 {approx = true} : vector<32x1xf32> -> vector<32x1xf32>
    %73 = arith.mulf %71, %72 : vector<32x1xf32>
    %cst_58 = arith.constant 2.000000e+00 : f32
    %74 = vector.broadcast %cst_58 : f32 to vector<32x1xf32>
    %75 = arith.subf %74, %73 : vector<32x1xf32>
    %76 = arith.mulf %72, %75 : vector<32x1xf32>
    %77 = vector.broadcast %76 : vector<32x1xf32> to vector<32x32xf32>
    %78 = arith.mulf %67, %77 : vector<32x32xf32>
    %79 = vector.extract_strided_slice %39 {offsets = [0, 0], sizes = [16, 32], strides = [1, 1]} : vector<32x32xf32> to vector<16x32xf32>
    %80 = vector.extract_strided_slice %78 {offsets = [0, 0], sizes = [16, 32], strides = [1, 1]} : vector<32x32xf32> to vector<16x32xf32>
    %81 = vector.extract_strided_slice %39 {offsets = [16, 0], sizes = [16, 32], strides = [1, 1]} : vector<32x32xf32> to vector<16x32xf32>
    %82 = vector.extract_strided_slice %78 {offsets = [16, 0], sizes = [16, 32], strides = [1, 1]} : vector<32x32xf32> to vector<16x32xf32>
    %83 = tpu.concatenate %79, %80, %81, %82 in 1 : vector<16x32xf32>, vector<16x32xf32>, vector<16x32xf32>, vector<16x32xf32> -> vector<16x128xf32>
    %c0_59 = arith.constant 0 : index
    %c0_60 = arith.constant 0 : index
    %84 = vector.load %arg6[%c0_59, %c0_60] : memref<16x128xf32, #tpu.memory_space<vmem>>, vector<16x128xf32>
    tpu.vector_store %arg6[%c0_59, %c0_60], %83 {strides = array<i32>} : memref<16x128xf32, #tpu.memory_space<vmem>>, vector<16x128xf32>,
    return
  }
  func.func @transform_0(%arg0: i32) -> (i32, i32) {
    %c0_i32 = arith.constant 0 : i32
    %c0_i32_0 = arith.constant 0 : i32
    %c0_i32_1 = arith.constant 0 : i32
    return %c0_i32, %c0_i32_0 : i32, i32
  }
  func.func @transform_1(%arg0: i32) -> (i32, i32, i32) {
    %c0_i32 = arith.constant 0 : i32
    %c0_i32_0 = arith.constant 0 : i32
    %c0_i32_1 = arith.constant 0 : i32
    %c0_i32_2 = arith.constant 0 : i32
    return %c0_i32, %c0_i32_0, %c0_i32_1 : i32, i32, i32
  }
  func.func @transform_2(%arg0: i32) -> (i32, i32, i32, i32) {
    %c0_i32 = arith.constant 0 : i32
    %c0_i32_0 = arith.constant 0 : i32
    %c0_i32_1 = arith.constant 0 : i32
    %c0_i32_2 = arith.constant 0 : i32
    %c0_i32_3 = arith.constant 0 : i32
    return %c0_i32, %c0_i32_0, %c0_i32_1, %c0_i32_2 : i32, i32, i32, i32
  }
  func.func @transform_3(%arg0: i32) -> (i32, i32, i32) {
    %c0_i32 = arith.constant 0 : i32
    %c0_i32_0 = arith.constant 0 : i32
    %c0_i32_1 = arith.constant 0 : i32
    %c0_i32_2 = arith.constant 0 : i32
    return %c0_i32, %c0_i32_0, %c0_i32_1 : i32, i32, i32
  }
  func.func @transform_4(%arg0: i32) -> (i32, i32) {
    %c0_i32 = arith.constant 0 : i32
    %c0_i32_0 = arith.constant 0 : i32
    %c0_i32_1 = arith.constant 0 : i32
    return %c0_i32, %c0_i32_0 : i32, i32
  }
  func.func @transform_5(%arg0: i32) -> (i32, i32) {
    %c0_i32 = arith.constant 0 : i32
    %c0_i32_0 = arith.constant 0 : i32
    %c0_i32_1 = arith.constant 0 : i32
    return %c0_i32, %c0_i32_0 : i32, i32
  }
}

</mosaic_0001>

<bundles_post_ra>
// kernel: multihop_forward.1
= control target key start
LH: loop header
LB: loop body
LE: loop exit
PB: predicated region body
PF: predicated region fallthrough
CT: control target
= control target key end

     0   :  { %vm139_vm0 = vcmask 1040384   ;;  %vm126_vm1 = vcmask 269312   ;;  %s1052_s21 = smov 32   ;;  %s1056_s12 = smov 96   ;;  %vm883_vm2 = vcmask 261120   ;;  %vm889_vm3 = vcmask 785408   ;;  %s1519_s0 = inlined_call_operand.vmem [shape: f32[128,33], index: 0, kind: input, shape index: {}]   ;;  %s1520_s1 = inlined_call_operand.vmem [shape: f32[2,128,128], index: 1, kind: input, shape index: {}]   ;;  %s1521_s2 = inlined_call_operand.vmem [shape: f32[2,4,33,33], index: 2, kind: input, shape index: {}]   ;;  %s1522_s4 = inlined_call_operand.vmem [shape: f32[32,1], index: 4, kind: input, shape index: {}]   ;;  %s1523_s3 = inlined_call_operand.vmem [shape: f32[2,33,32], index: 3, kind: input, shape index: {}]   ;;  %s1524_s5 = inlined_call_operand.vmem [shape: f32[16,128], index: 5, kind: output, shape index: {}]  }
   0x1   :  { %v39_v0 = vld [vmem:[%s1519_s0 + $0x78] sm:$0xff]  ;;  %v38_v1 = vld [vmem:[%s1519_s0 + $0x70] sm:$0xff]  ;;  %v37_v2 = vld [vmem:[%s1519_s0 + $0x68] sm:$0xff]  ;;  %vm886_vm4 = vcmask 523264  }
   0x2   :  { %56 = vmatpush.msra.mxu0 %v39_v0  ;;  %v36_v3 = vld [vmem:[%s1519_s0 + $0x60] sm:$0xff]  ;;  %v35_v4 = vld [vmem:[%s1519_s0 + $0x58] sm:$0xff]  ;;  %v34_v5 = vld [vmem:[%s1519_s0 + $0x50] sm:$0xff] }
   0x3   :  { %v33_v6 = vld [vmem:[%s1519_s0 + $0x48] sm:$0xff]  ;;  %v32_v7 = vld [vmem:[%s1519_s0 + $0x40] sm:$0xff]  ;;  %v31_v8 = vld [vmem:[%s1519_s0 + $0x38] sm:$0xff] }
   0x4   :  { %57 = vmatpush.msra.mxu0 %v38_v1  ;;  %v30_v9 = vld [vmem:[%s1519_s0 + $0x30] sm:$0xff]  ;;  %v29_v10 = vld [vmem:[%s1519_s0 + $0x28] sm:$0xff]  ;;  %v28_v11 = vld [vmem:[%s1519_s0 + $0x20] sm:$0xff] }
   0x5   :  { %v27_v12 = vld [vmem:[%s1519_s0 + $0x18] sm:$0xff]  ;;  %v26_v13 = vld [vmem:[%s1519_s0 + $0x10] sm:$0xff]  ;;  %v25_v14 = vld [vmem:[%s1519_s0 + $0x8] sm:$0xff] }
   0x6   :  { %58 = vmatpush.msra.mxu0 %v37_v2  ;;  %v24_v15 = vld [vmem:[%s1519_s0] sm:$0xff]  ;;  %v41_v17 = vld [vmem:[%s1520_s1 + $0x8] sm:$0xff]  ;;  %v42_v18 = vld [vmem:[%s1520_s1 + $0x10] sm:$0xff] }
   0x7   :  { %v40_v16 = vld [vmem:[%s1520_s1] sm:$0xff]  ;;  %v43_v19 = vld [vmem:[%s1520_s1 + $0x18] sm:$0xff]  ;;  %v45_v21 = vld [vmem:[%s1520_s1 + $0x28] sm:$0xff] }
   0x8   :  { %59 = vmatpush.msra.mxu0 %v36_v3  ;;  %v44_v20 = vld [vmem:[%s1520_s1 + $0x20] sm:$0xff]  ;;  %v46_v22 = vld [vmem:[%s1520_s1 + $0x30] sm:$0xff]  ;;  %v47_v23 = vld [vmem:[%s1520_s1 + $0x38] sm:$0xff] }
   0x9   :  { %v48_v24 = vld [vmem:[%s1520_s1 + $0x40] sm:$0xff]  ;;  %v49_v25 = vld [vmem:[%s1520_s1 + $0x48] sm:$0xff]  ;;  %v50_v26 = vld [vmem:[%s1520_s1 + $0x50] sm:$0xff] }
   0xa   :  { %60 = vmatpush.msra.mxu0 %v35_v4  ;;  %v125_v27 = vld [vmem:[%s1521_s2 + $0x20] sm:$0x1]  ;;  %v124_v28 = vld [vmem:[%s1521_s2 + $0x18] sm:$0xff]  ;;  %v123_v30 = vld [vmem:[%s1521_s2 + $0x10] sm:$0xff] }
   0xb   :  { %898 = vmatpush.msk.msra.mxu1 %vm139_vm0, %v125_v27  ;;  %1004 = vmatpush.msk.msra.mxu2 %vm139_vm0, %v125_v27  ;;  %v51_v29 = vld [vmem:[%s1520_s1 + $0x58] sm:$0xff]  ;;  %v122_v31 = vld [vmem:[%s1521_s2 + $0x8] sm:$0xff]  ;;  %v121_v32 = vld [vmem:[%s1521_s2] sm:$0xff] }
   0xc   :  { %61 = vmatpush.msra.mxu0 %v34_v5  ;;  %v52_v33 = vld [vmem:[%s1520_s1 + $0x60] sm:$0xff]  ;;  %v53_v34 = vld [vmem:[%s1520_s1 + $0x68] sm:$0xff]  ;;  %v54_v35 = vld [vmem:[%s1520_s1 + $0x70] sm:$0xff] }
   0xd   :  { %155 = vmatpush.msra.mxu1 %v124_v28  ;;  %1005 = vmatpush.msra.mxu2 %v124_v28  ;;  %v907_v36 = vld [vmem:[%s1521_s2 + $0x48] sm:$0x1]  ;;  %v55_v37 = vld [vmem:[%s1520_s1 + $0x78] sm:$0xff]  ;;  %v906_v38 = vld [vmem:[%s1521_s2 + $0x40] sm:$0xff] }
   0xe   :  { %62 = vmatpush.msra.mxu0 %v33_v6  ;;  %v905_v39 = vld [vmem:[%s1521_s2 + $0x38] sm:$0xff]  ;;  %v904_v40 = vld [vmem:[%s1521_s2 + $0x30] sm:$0xff]  ;;  %v903_v41 = vld [vmem:[%s1521_s2 + $0x28] sm:$0xff] }
   0xf   :  { %156 = vmatpush.msra.mxu1 %v123_v30  ;;  %1006 = vmatpush.msra.mxu2 %v123_v30  ;;  %v917_v45 = vld [vmem:[%s1521_s2 + $0x70] sm:$0x1]  ;;  %v916_v47 = vld [vmem:[%s1521_s2 + $0x68] sm:$0xff]  ;;  %v915_v48 = vld [vmem:[%s1521_s2 + $0x60] sm:$0xff] }
  0x10   :  { %63 = vmatpush.msra.mxu0 %v32_v7  ;;  %918 = vmatpush.msk.msra.mxu3 %vm139_vm0, %v917_v45  ;;  %v914_v49 = vld [vmem:[%s1521_s2 + $0x58] sm:$0xff]  ;;  %v913_v50 = vld [vmem:[%s1521_s2 + $0x50] sm:$0xff]  ;;  %v925_v57 = vld [vmem:[%s1521_s2 + $0x88] sm:$0xff] }
  0x11   :  { %157 = vmatpush.msra.mxu1 %v122_v31  ;;  %1007 = vmatpush.msra.mxu2 %v122_v31  ;;  %v927_v54 = vld [vmem:[%s1521_s2 + $0x98] sm:$0x1]  ;;  %v926_v55 = vld [vmem:[%s1521_s2 + $0x90] sm:$0xff]  ;;  %v924_v58 = vld [vmem:[%s1521_s2 + $0x80] sm:$0xff] }
  0x12   :  { %64 = vmatpush.msra.mxu0 %v31_v8  ;;  %255 = vmatpush.msra.mxu3 %v916_v47  ;;  %v923_v59 = vld [vmem:[%s1521_s2 + $0x78] sm:$0xff]  ;;  %v20_v62 = vld [vmem:[%s1522_s4] sm:$0xff]  ;;  %v21_v0 = vld [vmem:[%s1522_s4 + $0x8] sm:$0xff] }
  0x13   :  { %158 = vmatpush.msra.mxu1 %v121_v32  ;;  %1008 = vmatpush.msra.mxu2 %v121_v32  ;;  %v22_v2 = vld [vmem:[%s1522_s4 + $0x10] sm:$0xff]  ;;  %v23_v3 = vld [vmem:[%s1522_s4 + $0x18] sm:$0xff]  ;;  %v338_v8 = vld [vmem:[%s1523_s3 + $0x20] sm:$0x1] }
  0x14   :  { %65 = vmatpush.msra.mxu0 %v30_v9  ;;  %256 = vmatpush.msra.mxu3 %v915_v48  ;;  %v337_v9 = vld [vmem:[%s1523_s3 + $0x18] sm:$0xff] }
  0x15   :  { %908 = vmatpush.msk.msrb.mxu2 %vm139_vm0, %v907_v36  ;;  %928 = vmatpush.msk.msrb.mxu1 %vm139_vm0, %v927_v54 }
  0x16   :  { %66 = vmatpush.msra.mxu0 %v29_v10  ;;  %257 = vmatpush.msra.mxu3 %v914_v49  ;;  %v336_v10 = vld [vmem:[%s1523_s3 + $0x10] sm:$0xff] }
  0x17   :  { %205 = vmatpush.msrb.mxu2 %v906_v38  ;;  %305 = vmatpush.msrb.mxu1 %v926_v55 }
  0x18   :  { %67 = vmatpush.msra.mxu0 %v28_v11  ;;  %258 = vmatpush.msra.mxu3 %v913_v50  ;;  %v335_v11 = vld [vmem:[%s1523_s3 + $0x8] sm:$0xff] }
  0x19   :  { %206 = vmatpush.msrb.mxu2 %v905_v39  ;;  %306 = vmatpush.msrb.mxu1 %v925_v57  ;;  %v939_v57 = vld [vmem:[%s1520_s1 + $0x88] sm:$0xff] }
  0x1a   :  { %68 = vmatpush.msra.mxu0 %v27_v12  ;;  %407 = vrot.lane.b32.xlu0 %v20_v62, %s1052_s21 }
  0x1b   :  { %207 = vmatpush.msrb.mxu2 %v904_v40  ;;  %307 = vmatpush.msrb.mxu1 %v924_v58  ;;  %v940_v58 = vld [vmem:[%s1520_s1 + $0x90] sm:$0xff] }
  0x1c   :  { %69 = vmatpush.msra.mxu0 %v26_v13  ;;  %411 = vrot.lane.b32.xlu1 %v22_v2, %s1052_s21  ;;  %v334_v13 = vld [vmem:[%s1523_s3] sm:$0xff] }
  0x1d   :  { %208 = vmatpush.msrb.mxu2 %v903_v41  ;;  %308 = vmatpush.msrb.mxu1 %v923_v59  ;;  %v941_v59 = vld [vmem:[%s1520_s1 + $0x98] sm:$0xff] }
  0x1e   :  { %70 = vmatpush.msra.mxu0 %v25_v14 }
  0x20   :  { %71 = vmatpush.msra.mxu0 %v24_v15 }
  0x21   :  { %72 = vmatmul.f32.vlgmr.msra.gmra.mxu0 %v40_v16  ;;  %v1053_v16 = vmov 0  }
  0x22   :  { %409 = vrot.lane.b32.xlu0 %v21_v0, %s1052_s21  ;;  %1030 = vset.pattern.permute.xlu2 %v1053_v16 }
  0x23   :  { %1031 = vset.pattern.permute.xlu0 %v1053_v16  ;;  %385 = vperm.xlu2 %1030, %v20_v62   ;;  %v944_v62 = vld [vmem:[%s1520_s1 + $0xb0] sm:$0xff] }
  0x24   :  { %413 = vrot.lane.b32.xlu1 %v23_v3, %s1052_s21 }
  0x25   :  { %1032 = vset.pattern.permute.xlu1 %v1053_v16  ;;  %v972_v16 = vld [vmem:[%s1521_s2 + $0x108] sm:$0xff] }
  0x29   :  { %75 = vmatmul.f32.gmra.mxu0 %v41_v17 }
  0x2a   :  { %395 = vperm.xlu0 %1031, %v22_v2   ;;  %v938_v2 = vld [vmem:[%s1520_s1 + $0x80] sm:$0xff] }
  0x2b   :  { %390 = vperm.xlu2 %1030, %v21_v0   ;;  %v946_v0 = vld [vmem:[%s1520_s1 + $0xc0] sm:$0xff] }
  0x2c   :  { %400 = vperm.xlu1 %1032, %v23_v3   ;;  %v948_v3 = vld [vmem:[%s1520_s1 + $0xd0] sm:$0xff] }
  0x31   :  { %78 = vmatmul.f32.gmra.mxu0 %v42_v18 }
  0x39   :  { %81 = vmatmul.f32.gmra.mxu0 %v43_v19 }
  0x41   :  { %84 = vmatmul.f32.gmra.mxu0 %v44_v20 }
  0x49   :  { %87 = vmatmul.f32.gmra.mxu0 %v45_v21 }
  0x51   :  { %90 = vmatmul.f32.gmra.mxu0 %v46_v22 }
  0x59   :  { %93 = vmatmul.f32.gmra.mxu0 %v47_v23 }
  0x61   :  { %96 = vmatmul.f32.gmra.mxu0 %v48_v24 }
  0x69   :  { %99 = vmatmul.f32.gmra.mxu0 %v49_v25 }
  0x71   :  { %102 = vmatmul.f32.gmra.mxu0 %v50_v26  ;;  %v1054_v26 = vmov 32  }
  0x72   :  { %1033 = vset.pattern.permute.xlu2 %v1054_v26  ;;  %1034 = vset.pattern.permute.xlu0 %v1054_v26 }
  0x73   :  { %1035 = vset.pattern.permute.xlu1 %v1054_v26  ;;  %v957_v26 = vld [vmem:[%s1521_s2 + $0xb8] sm:$0xff] }
  0x79   :  { %105 = vmatmul.f32.gmra.mxu0 %v51_v29 }
  0x81   :  { %108 = vmatmul.f32.gmra.mxu0 %v52_v33 }
  0x89   :  { %111 = vmatmul.f32.gmra.mxu0 %v53_v34 }
  0x8e   :  { %v1324_v34 = vpop.permute.xlu1 %411 }
  0x91   :  { %114 = vmatmul.f32.gmra.mxu0 %v54_v35 }
  0x96   :  { %v1329_v45 = vpop.permute.xlu1 %413 }
  0x99   :  { %117 = vmatmul.f32.gmra.mxu0 %v55_v37 }
  0x9e   :  { %v73_v42 = vpop.f32.mrf.mxu0 }
  0x9f   :  { %899 = vmatmul.msk.f32.vlgmr.msra.gmra.mxu1 %vm126_vm1, %v73_v42 }
  0xa6   :  { %v76_v43 = vpop.f32.mrf.mxu0 }
  0xa7   :  { %900 = vmatmul.msk.f32.gmra.mxu1 %vm126_vm1, %v76_v43 }
  0xae   :  { %v79_v44 = vpop.f32.mrf.mxu0 }
  0xaf   :  { %901 = vmatmul.msk.f32.vlgmr.msra.gmra.mxu2 %vm126_vm1, %v79_v44 }
  0xb0   :  { %933 = vmatpush.msk.msra.mxu2 %vm139_vm0, %v338_v8  ;;  %v953_v8 = vld [vmem:[%s1520_s1 + $0xf8] sm:$0xff] }
  0xb2   :  { %366 = vmatpush.msra.mxu2 %v337_v9  ;;  %v963_v9 = vld [vmem:[%s1521_s2 + $0xe8] sm:$0x1] }
  0xb4   :  { %367 = vmatpush.msra.mxu2 %v336_v10  ;;  %v962_v10 = vld [vmem:[%s1521_s2 + $0xe0] sm:$0xff] }
  0xb6   :  { %v82_v46 = vpop.f32.mrf.mxu0  ;;  %368 = vmatpush.msra.mxu2 %v335_v11  ;;  %v961_v11 = vld [vmem:[%s1521_s2 + $0xd8] sm:$0xff] }
  0xb7   :  { %902 = vmatmul.msk.f32.gmra.mxu2 %vm126_vm1, %v82_v46 }
  0xb8   :  { %369 = vmatpush.msra.mxu2 %v334_v13  ;;  %v959_v13 = vld [vmem:[%s1521_s2 + $0xc8] sm:$0xff] }
  0xbe   :  { %v85_v51 = vpop.f32.mrf.mxu0 }
  0xbf   :  { %909 = vmatmul.msk.f32.vlgmr.msrb.gmra.mxu2 %vm126_vm1, %v85_v51 }
  0xc6   :  { %v88_v52 = vpop.f32.mrf.mxu0 }
  0xc7   :  { %910 = vmatmul.msk.f32.gmra.mxu2 %vm126_vm1, %v88_v52 }
  0xce   :  { %v91_v53 = vpop.f32.mrf.mxu0 }
  0xcf   :  { %911 = vmatmul.msk.f32.gmra.mxu2 %vm126_vm1, %v91_v53 }
  0xd6   :  { %v94_v56 = vpop.f32.mrf.mxu0 }
  0xd7   :  { %912 = vmatmul.msk.f32.gmra.mxu2 %vm126_vm1, %v94_v56 }
  0xde   :  { %v97_v60 = vpop.f32.mrf.mxu0 }
  0xdf   :  { %919 = vmatmul.msk.f32.vlgmr.msra.gmra.mxu3 %vm126_vm1, %v97_v60  ;;  %v942_v60 = vld [vmem:[%s1520_s1 + $0xa0] sm:$0xff] }
  0xe6   :  { %v100_v61 = vpop.f32.mrf.mxu0 }
  0xe7   :  { %920 = vmatmul.msk.f32.gmra.mxu3 %vm126_vm1, %v100_v61  ;;  %v943_v61 = vld [vmem:[%s1520_s1 + $0xa8] sm:$0xff] }
  0xee   :  { %v103_v63 = vpop.f32.mrf.mxu0 }
  0xef   :  { %921 = vmatmul.msk.f32.gmra.mxu3 %vm126_vm1, %v103_v63  ;;  %v945_v63 = vld [vmem:[%s1520_s1 + $0xb8] sm:$0xff] }
  0xf6   :  { %v106_v1 = vpop.f32.mrf.mxu0 }
  0xf7   :  { %922 = vmatmul.msk.f32.gmra.mxu3 %vm126_vm1, %v106_v1  ;;  %v947_v1 = vld [vmem:[%s1520_s1 + $0xc8] sm:$0xff] }
  0xfe   :  { %v109_v4 = vpop.f32.mrf.mxu0 }
  0xff   :  { %929 = vmatmul.msk.f32.vlgmr.msrb.gmra.mxu1 %vm126_vm1, %v109_v4  ;;  %v949_v4 = vld [vmem:[%s1520_s1 + $0xd8] sm:$0xff] }
 0x106   :  { %v112_v5 = vpop.f32.mrf.mxu0 }
 0x107   :  { %930 = vmatmul.msk.f32.gmra.mxu1 %vm126_vm1, %v112_v5  ;;  %v950_v5 = vld [vmem:[%s1520_s1 + $0xe0] sm:$0xff] }
 0x10e   :  { %v115_v6 = vpop.f32.mrf.mxu0 }
 0x10f   :  { %931 = vmatmul.msk.f32.gmra.mxu1 %vm126_vm1, %v115_v6  ;;  %v951_v6 = vld [vmem:[%s1520_s1 + $0xe8] sm:$0xff] }
 0x116   :  { %v118_v7 = vpop.f32.mrf.mxu0 }
 0x117   :  { %932 = vmatmul.msk.f32.gmra.mxu1 %vm126_vm1, %v118_v7  ;;  %v952_v7 = vld [vmem:[%s1520_s1 + $0xf0] sm:$0xff] }
 0x11c   :  { %v1300_v15 = vpop.f32.mrf.mxu1 }
 0x124   :  { %v1306_v19 = vpop.f32.mrf.mxu1 }
 0x132   :  { %v1293_v12 = vpop.f32.mrf.mxu2 }
 0x13a   :  { %v1298_v14 = vpop.f32.mrf.mxu2 }
 0x142   :  { %v1302_v17 = vpop.f32.mrf.mxu2 }
 0x143   :  { %v322_v20 = vadd.f32 %v1302_v17, %v1300_v15 }
 0x14a   :  { %v1310_v21 = vpop.f32.mrf.mxu2 }
 0x14b   :  { %v323_v27 = vadd.f32 %v1310_v21, %v1306_v19 }
 0x152   :  { %v216_v29 = vpop.f32.mrf.mxu2 }
 0x153   :  { %v324_v33 = vadd.f32 %v216_v29, %v1293_v12 }
 0x15a   :  { %v219_v38 = vpop.f32.mrf.mxu2 }
 0x15b   :  { %v325_v41 = vadd.f32 %v219_v38, %v1298_v14 }
 0x162   :  { %v1304_v18 = vpop.f32.mrf.mxu3 }
 0x163   :  { %v326_v22 = vadd.f32 %v322_v20, %v1304_v18 }
 0x16a   :  { %v263_v23 = vpop.f32.mrf.mxu3 }
 0x16b   :  { %v327_v28 = vadd.f32 %v323_v27, %v263_v23  ;;  %v983_v27 = vld [vmem:[%s1521_s2 + $0x138] sm:$0x1] }
 0x172   :  { %v266_v32 = vpop.f32.mrf.mxu3 }
 0x173   :  { %v328_v35 = vadd.f32 %v324_v33, %v266_v32 }
 0x17a   :  { %v269_v40 = vpop.f32.mrf.mxu3 }
 0x17b   :  { %v329_v43 = vadd.f32 %v325_v41, %v269_v40 }
 0x17c   :  { %v310_v24 = vpop.f32.mrf.mxu1 }
 0x17d   :  { %v1313_v25 = vadd.f32 %v326_v22, %v310_v24 }
 0x17f   :  { %934 = vmatmul.msk.f32.vlgmr.msra.gmra.mxu2 %vm126_vm1, %v1313_v25 }
 0x184   :  { %v313_v30 = vpop.f32.mrf.mxu1 }
 0x185   :  { %v1319_v31 = vadd.f32 %v327_v28, %v313_v30  ;;  %v956_v28 = vld [vmem:[%s1521_s2 + $0xb0] sm:$0xff] }
 0x187   :  { %935 = vmatmul.msk.f32.gmra.mxu2 %vm126_vm1, %v1319_v31 }
 0x18c   :  { %v316_v36 = vpop.f32.mrf.mxu1 }
 0x18d   :  { %v332_v37 = vadd.f32 %v328_v35, %v316_v36  ;;  %v981_v35 = vld [vmem:[%s1521_s2 + $0x128] sm:$0xff] }
 0x18f   :  { %v421_v39 = vmul.f32 %v1324_v34, %v332_v37  ;;  %936 = vmatmul.msk.f32.gmra.mxu2 %vm126_vm1, %v332_v37  ;;  %v980_v37 = vld [vmem:[%s1521_s2 + $0x120] sm:$0xff] }
 0x191   :  { %v425_v42 = vadd.f32 1e-20, %v421_v39  ;;  %v979_v39 = vld [vmem:[%s1521_s2 + $0x118] sm:$0xff] }
 0x193   :  { %1036 = vrcp.f32 %v425_v42 }
 0x194   :  { %v319_v44 = vpop.f32.mrf.mxu1 }
 0x195   :  { %v333_v46 = vadd.f32 %v329_v43, %v319_v44  ;;  %484 = vmatpush.msra.mxu1 %v319_v44  ;;  %1009 = vmatpush.msrb.mxu3 %v319_v44 }
 0x197   :  { %v422_v47 = vmul.f32 %v1329_v45, %v333_v46  ;;  %937 = vmatmul.msk.f32.gmra.mxu2 %vm126_vm1, %v333_v46  ;;  %485 = vmatpush.msra.mxu1 %v316_v36 }
 0x198   :  { %1010 = vmatpush.msrb.mxu3 %v316_v36  ;;  %v954_v36 = vld [vmem:[%s1521_s2 + $0xa0] sm:$0xff] }
 0x199   :  { %v1037_v48 = vpop.eup %1036  ;;  %v426_v49 = vadd.f32 1e-20, %v422_v47  ;;  %486 = vmatpush.msra.mxu1 %v313_v30 }
 0x19a   :  { %v433_v50 = vmul.f32 %v1037_v48, %v425_v42  ;;  %1011 = vmatpush.msrb.mxu3 %v313_v30  ;;  %v982_v30 = vld [vmem:[%s1521_s2 + $0x130] sm:$0xff] }
 0x19b   :  { %1038 = vrcp.f32 %v426_v49  ;;  %487 = vmatpush.msra.mxu1 %v310_v24 }
 0x19c   :  { %v437_v51 = vsub.f32 2.0, %v433_v50  ;;  %1012 = vmatpush.msrb.mxu3 %v310_v24 }
 0x19d   :  { %488 = vmatpush.msra.mxu1 %v269_v40 }
 0x19e   :  { %1013 = vmatpush.msrb.mxu3 %v269_v40  ;;  %v441_v52 = vmul.f32 %v1037_v48, %v437_v51  ;;  %v998_v51 = vld [vmem:[%s1523_s3 + $0x48] sm:$0x1] }
 0x19f   :  { %489 = vmatpush.msra.mxu1 %v266_v32 }
 0x1a0   :  { %1014 = vmatpush.msrb.mxu3 %v266_v32  ;;  %455 = vperm.xlu2 %1033, %v441_v52   ;;  %v955_v32 = vld [vmem:[%s1521_s2 + $0xa8] sm:$0xff] }
 0x1a1   :  { %v1039_v53 = vpop.eup %1038  ;;  %490 = vmatpush.msra.mxu1 %v263_v23 }
 0x1a2   :  { %v434_v54 = vmul.f32 %v1039_v53, %v426_v49  ;;  %1015 = vmatpush.msrb.mxu3 %v263_v23  ;;  %v958_v23 = vld [vmem:[%s1521_s2 + $0xc0] sm:$0x1] }
 0x1a3   :  { %491 = vmatpush.msra.mxu1 %v1304_v18 }
 0x1a4   :  { %v438_v55 = vsub.f32 2.0, %v434_v54  ;;  %1016 = vmatpush.msrb.mxu3 %v1304_v18 }
 0x1a5   :  { %492 = vmatpush.msra.mxu1 %v219_v38 }
 0x1a6   :  { %1017 = vmatpush.msrb.mxu3 %v219_v38  ;;  %v442_v56 = vmul.f32 %v1039_v53, %v438_v55  ;;  %v997_v53 = vld [vmem:[%s1523_s3 + $0x40] sm:$0xff] }
 0x1a7   :  { %493 = vmatpush.msra.mxu1 %v216_v29 }
 0x1a8   :  { %1018 = vmatpush.msrb.mxu3 %v216_v29  ;;  %460 = vperm.xlu0 %1034, %v442_v56   ;;  %v996_v56 = vld [vmem:[%s1523_s3 + $0x38] sm:$0xff] }
 0x1a9   :  { %494 = vmatpush.msra.mxu1 %v1310_v21 }
 0x1aa   :  { %1019 = vmatpush.msrb.mxu3 %v1310_v21  ;;  %v969_v21 = vld [vmem:[%s1521_s2 + $0xf0] sm:$0xff] }
 0x1ab   :  { %495 = vmatpush.msra.mxu1 %v1302_v17 }
 0x1ac   :  { %1020 = vmatpush.msrb.mxu3 %v1302_v17  ;;  %v971_v17 = vld [vmem:[%s1521_s2 + $0x100] sm:$0xff] }
 0x1ad   :  { %496 = vmatpush.msra.mxu1 %v1298_v14 }
 0x1ae   :  { %1021 = vmatpush.msrb.mxu3 %v1298_v14  ;;  %v973_v14 = vld [vmem:[%s1521_s2 + $0x110] sm:$0x1] }
 0x1af   :  { %497 = vmatpush.msra.mxu1 %v1293_v12  ;;  %974 = vmatpush.msk.msrb.mxu2 %vm139_vm0, %v973_v14 }
 0x1b0   :  { %1022 = vmatpush.msrb.mxu3 %v1293_v12  ;;  %v960_v12 = vld [vmem:[%s1521_s2 + $0xd0] sm:$0xff] }
 0x1b1   :  { %498 = vmatpush.msra.mxu1 %v1306_v19  ;;  %638 = vmatpush.msrb.mxu2 %v972_v16 }
 0x1b2   :  { %1023 = vmatpush.msrb.mxu3 %v1306_v19  ;;  %v970_v19 = vld [vmem:[%s1521_s2 + $0xf8] sm:$0xff] }
 0x1b3   :  { %499 = vmatpush.msra.mxu1 %v1300_v15  ;;  %639 = vmatpush.msrb.mxu2 %v971_v17 }
 0x1b4   :  { %1024 = vmatpush.msrb.mxu3 %v1300_v15  ;;  %500 = vmatmul.f32.vlgmr.msra.gmra.mxu1 %v938_v2 }
 0x1b5   :  { %503 = vmatmul.f32.vlgmr.msrb.gmra.mxu3 %v939_v57  ;;  %964 = vmatpush.msk.msrb.mxu1 %vm139_vm0, %v963_v9 }
 0x1b6   :  { %640 = vmatpush.msrb.mxu2 %v970_v19 }
 0x1b7   :  { %588 = vmatpush.msrb.mxu1 %v962_v10 }
 0x1b8   :  { %641 = vmatpush.msrb.mxu2 %v969_v21 }
 0x1b9   :  { %589 = vmatpush.msrb.mxu1 %v961_v11 }
 0x1ba   :  { %989 = vmatpush.msk.msra.mxu2 %vm139_vm0, %v958_v23 }
 0x1bb   :  { %590 = vmatpush.msrb.mxu1 %v960_v12 }
 0x1bc   :  { %732 = vmatpush.msra.mxu2 %v957_v26 }
 0x1bd   :  { %506 = vmatmul.f32.gmra.mxu3 %v940_v58  ;;  %591 = vmatpush.msrb.mxu1 %v959_v13 }
 0x1be   :  { %733 = vmatpush.msra.mxu2 %v956_v28 }
 0x1bf   :  { %984 = vmatpush.msk.msra.mxu1 %vm139_vm0, %v983_v27 }
 0x1c0   :  { %734 = vmatpush.msra.mxu2 %v955_v32 }
 0x1c1   :  { %688 = vmatpush.msra.mxu1 %v982_v30 }
 0x1c2   :  { %735 = vmatpush.msra.mxu2 %v954_v36 }
 0x1c3   :  { %689 = vmatpush.msra.mxu1 %v981_v35 }
 0x1c5   :  { %509 = vmatmul.f32.gmra.mxu3 %v941_v59  ;;  %690 = vmatpush.msra.mxu1 %v980_v37  ;;  %v995_v59 = vld [vmem:[%s1523_s3 + $0x30] sm:$0xff] }
 0x1c7   :  { %691 = vmatpush.msra.mxu1 %v979_v39 }
 0x1cd   :  { %512 = vmatmul.f32.gmra.mxu3 %v942_v60  ;;  %v994_v60 = vld [vmem:[%s1523_s3 + $0x28] sm:$0xff]  ;;  %s1055_s3 = smov 64  }
 0x1d5   :  { %515 = vmatmul.f32.gmra.mxu3 %v943_v61 }
 0x1dd   :  { %518 = vmatmul.f32.gmra.mxu3 %v944_v62 }
 0x1e5   :  { %521 = vmatmul.f32.gmra.mxu3 %v945_v63 }
 0x1ed   :  { %524 = vmatmul.f32.gmra.mxu3 %v946_v0 }
 0x1f5   :  { %527 = vmatmul.f32.gmra.mxu3 %v947_v1 }
 0x1fd   :  { %530 = vmatmul.f32.gmra.mxu3 %v948_v3 }
 0x202   :  { %v1475_v49 = vpop.f32.mrf.mxu2 }
 0x205   :  { %533 = vmatmul.f32.gmra.mxu3 %v949_v4 }
 0x20a   :  { %v1477_v50 = vpop.f32.mrf.mxu2 }
 0x20d   :  { %536 = vmatmul.f32.gmra.mxu3 %v950_v5 }
 0x212   :  { %v1483_v52 = vpop.f32.mrf.mxu2 }
 0x215   :  { %539 = vmatmul.f32.gmra.mxu3 %v951_v6  ;;  %v408_v6 = vpop.permute.xlu0 %407 }
 0x216   :  { %v419_v26 = vmul.f32 %v408_v6, %v1313_v25 }
 0x21a   :  { %v1488_v55 = vpop.f32.mrf.mxu2 }
 0x21d   :  { %542 = vmatmul.f32.gmra.mxu3 %v952_v7 }
 0x225   :  { %545 = vmatmul.f32.gmra.mxu3 %v953_v8 }
 0x231   :  { %v501_v43 = vpop.f32.mrf.mxu1 }
 0x238   :  { %v504_v15 = vpop.f32.mrf.mxu3 }
 0x240   :  { %v507_v18 = vpop.f32.mrf.mxu3 }
 0x248   :  { %v510_v20 = vpop.f32.mrf.mxu3 }
 0x250   :  { %v513_v22 = vpop.f32.mrf.mxu3 }
 0x251   :  { %965 = vmatmul.msk.f32.vlgmr.msrb.gmra.mxu1 %vm126_vm1, %v513_v22 }
 0x252   :  { %999 = vmatpush.msk.msrb.mxu1 %vm139_vm0, %v998_v51 }
 0x254   :  { %790 = vmatpush.msrb.mxu1 %v997_v53 }
 0x256   :  { %791 = vmatpush.msrb.mxu1 %v996_v56 }
 0x258   :  { %v516_v24 = vpop.f32.mrf.mxu3  ;;  %792 = vmatpush.msrb.mxu1 %v995_v59 }
 0x259   :  { %966 = vmatmul.msk.f32.gmra.mxu1 %vm126_vm1, %v516_v24 }
 0x25a   :  { %793 = vmatpush.msrb.mxu1 %v994_v60 }
 0x260   :  { %v519_v29 = vpop.f32.mrf.mxu3 }
 0x261   :  { %967 = vmatmul.msk.f32.gmra.mxu1 %vm126_vm1, %v519_v29 }
 0x268   :  { %v522_v33 = vpop.f32.mrf.mxu3 }
 0x269   :  { %968 = vmatmul.msk.f32.gmra.mxu1 %vm126_vm1, %v522_v33  ;;  %v423_v33 = vadd.f32 1e-20, %v419_v26 }
 0x270   :  { %v525_v38 = vpop.f32.mrf.mxu3 }
 0x271   :  { %975 = vmatmul.msk.f32.vlgmr.msrb.gmra.mxu2 %vm126_vm1, %v525_v38 }
 0x278   :  { %v528_v40 = vpop.f32.mrf.mxu3 }
 0x279   :  { %976 = vmatmul.msk.f32.gmra.mxu2 %vm126_vm1, %v528_v40 }
 0x280   :  { %v531_v41 = vpop.f32.mrf.mxu3 }
 0x281   :  { %977 = vmatmul.msk.f32.gmra.mxu2 %vm126_vm1, %v531_v41 }
 0x288   :  { %v534_v42 = vpop.f32.mrf.mxu3 }
 0x289   :  { %978 = vmatmul.msk.f32.gmra.mxu2 %vm126_vm1, %v534_v42 }
 0x290   :  { %v537_v44 = vpop.f32.mrf.mxu3 }
 0x291   :  { %990 = vmatmul.msk.f32.vlgmr.msra.gmra.mxu2 %vm126_vm1, %v501_v43  ;;  %985 = vmatmul.msk.f32.vlgmr.msra.gmra.mxu1 %vm126_vm1, %v537_v44 }
 0x298   :  { %v540_v46 = vpop.f32.mrf.mxu3 }
 0x299   :  { %991 = vmatmul.msk.f32.gmra.mxu2 %vm126_vm1, %v504_v15  ;;  %986 = vmatmul.msk.f32.gmra.mxu1 %vm126_vm1, %v540_v46  ;;  %v410_v15 = vpop.permute.xlu0 %409 }
 0x29a   :  { %v420_v25 = vmul.f32 %v410_v15, %v1319_v31  ;;  %v386_v31 = vpop.permute.xlu2 %385 }
 0x29c   :  { %v424_v44 = vadd.f32 1e-20, %v420_v25 }
 0x2a0   :  { %v543_v47 = vpop.f32.mrf.mxu3 }
 0x2a1   :  { %992 = vmatmul.msk.f32.gmra.mxu2 %vm126_vm1, %v507_v18  ;;  %987 = vmatmul.msk.f32.gmra.mxu1 %vm126_vm1, %v543_v47 }
 0x2a8   :  { %v546_v48 = vpop.f32.mrf.mxu3 }
 0x2a9   :  { %993 = vmatmul.msk.f32.gmra.mxu2 %vm126_vm1, %v510_v20  ;;  %988 = vmatmul.msk.f32.gmra.mxu1 %vm126_vm1, %v546_v48 }
 0x2ce   :  { %v593_v54 = vpop.f32.mrf.mxu1 }
 0x2d6   :  { %v596_v57 = vpop.f32.mrf.mxu1 }
 0x2de   :  { %v599_v62 = vpop.f32.mrf.mxu1 }
 0x2e6   :  { %v602_v0 = vpop.f32.mrf.mxu1 }
 0x2f4   :  { %v643_v58 = vpop.f32.mrf.mxu2 }
 0x2fc   :  { %v646_v61 = vpop.f32.mrf.mxu2 }
 0x304   :  { %v649_v63 = vpop.f32.mrf.mxu2 }
 0x30c   :  { %v652_v1 = vpop.f32.mrf.mxu2 }
 0x30e   :  { %v693_v2 = vpop.f32.mrf.mxu1 }
 0x314   :  { %v737_v3 = vpop.f32.mrf.mxu2 }
 0x315   :  { %v738_v4 = vadd.f32 %v737_v3, %v593_v54 }
 0x316   :  { %v696_v8 = vpop.f32.mrf.mxu1 }
 0x317   :  { %v749_v5 = vadd.f32 %v738_v4, %v643_v58 }
 0x319   :  { %v753_v7 = vadd.f32 %v749_v5, %v693_v2  ;;  %v396_v2 = vpop.permute.xlu0 %395 }
 0x31a   :  { %v405_v3 = vmul.f32 %v396_v2, %v1483_v52 }
 0x31b   :  { %v811_v9 = vmul.f32 %v753_v7, %v408_v6  ;;  %1000 = vmatmul.msk.f32.vlgmr.msrb.gmra.mxu1 %vm126_vm1, %v753_v7 }
 0x31c   :  { %v740_v10 = vpop.f32.mrf.mxu2 }
 0x31d   :  { %v815_v11 = vadd.f32 1e-20, %v811_v9  ;;  %v741_v12 = vadd.f32 %v740_v10, %v596_v57  ;;  %v401_v10 = vpop.permute.xlu1 %400 }
 0x31e   :  { %v699_v18 = vpop.f32.mrf.mxu1 }
 0x31f   :  { %1040 = vrcp.f32 %v815_v11  ;;  %v750_v13 = vadd.f32 %v741_v12, %v646_v61 }
 0x321   :  { %v754_v14 = vadd.f32 %v750_v13, %v696_v8  ;;  %v461_v13 = vpop.permute.xlu0 %460 }
 0x323   :  { %v812_v16 = vmul.f32 %v754_v14, %v410_v15  ;;  %1001 = vmatmul.msk.f32.gmra.mxu1 %vm126_vm1, %v754_v14 }
 0x324   :  { %v743_v17 = vpop.f32.mrf.mxu2 }
 0x325   :  { %v1041_v19 = vpop.eup %1040  ;;  %v816_v20 = vadd.f32 1e-20, %v812_v16  ;;  %v744_v21 = vadd.f32 %v743_v17, %v599_v62 }
 0x326   :  { %v823_v22 = vmul.f32 %v1041_v19, %v815_v11  ;;  %v702_v38 = vpop.f32.mrf.mxu1  ;;  %v406_v11 = vmul.f32 %v401_v10, %v1488_v55 }
 0x327   :  { %1042 = vrcp.f32 %v816_v20  ;;  %v751_v23 = vadd.f32 %v744_v21, %v649_v63 }
 0x328   :  { %v827_v24 = vsub.f32 2.0, %v823_v22  ;;  %v466_v14 = vmul.f32 %v461_v13, %v406_v11 }
 0x329   :  { %v755_v27 = vadd.f32 %v751_v23, %v699_v18 }
 0x32a   :  { %v831_v28 = vmul.f32 %v1041_v19, %v827_v24 }
 0x32b   :  { %v813_v29 = vmul.f32 %v755_v27, %v1324_v34  ;;  %1002 = vmatmul.msk.f32.gmra.mxu1 %vm126_vm1, %v755_v27 }
 0x32c   :  { %v746_v30 = vpop.f32.mrf.mxu2  ;;  %837 = vperm.xlu2 %1033, %v831_v28  }
 0x32d   :  { %v1043_v32 = vpop.eup %1042  ;;  %v817_v35 = vadd.f32 1e-20, %v813_v29  ;;  %v747_v36 = vadd.f32 %v746_v30, %v602_v0  ;;  %v391_v0 = vpop.permute.xlu2 %390 }
 0x32e   :  { %v824_v37 = vmul.f32 %v1043_v32, %v816_v20  ;;  %v404_v29 = vmul.f32 %v391_v0, %v1477_v50 }
 0x32f   :  { %1044 = vrcp.f32 %v817_v35  ;;  %v752_v39 = vadd.f32 %v747_v36, %v652_v1 }
 0x330   :  { %v828_v40 = vsub.f32 2.0, %v824_v37  ;;  %1046 = vrcp.f32 %v423_v33 }
 0x331   :  { %v756_v41 = vadd.f32 %v752_v39, %v702_v38 }
 0x332   :  { %v832_v42 = vmul.f32 %v1043_v32, %v828_v40 }
 0x333   :  { %v814_v34 = vmul.f32 %v756_v41, %v1329_v45  ;;  %1003 = vmatmul.msk.f32.gmra.mxu1 %vm126_vm1, %v756_v41 }
 0x334   :  { %842 = vperm.xlu1 %1035, %v832_v42  }
 0x335   :  { %v1045_v43 = vpop.eup %1044  ;;  %v818_v46 = vadd.f32 1e-20, %v814_v34  ;;  %v456_v4 = vpop.permute.xlu2 %455 }
 0x336   :  { %v825_v47 = vmul.f32 %v1045_v43, %v817_v35  ;;  %v1047_v48 = vpop.eup %1046  ;;  %v465_v5 = vmul.f32 %v456_v4, %v405_v3 }
 0x337   :  { %1048 = vrcp.f32 %v818_v46  ;;  %v431_v53 = vmul.f32 %v1047_v48, %v423_v33  ;;  %v403_v33 = vmul.f32 %v386_v31, %v1475_v49 }
 0x338   :  { %v829_v51 = vsub.f32 2.0, %v825_v47  ;;  %1050 = vrcp.f32 %v424_v44 }
 0x339   :  { %v435_v57 = vsub.f32 2.0, %v431_v53 }
 0x33a   :  { %v833_v54 = vmul.f32 %v1045_v43, %v829_v51 }
 0x33b   :  { %v439_v61 = vmul.f32 %v1047_v48, %v435_v57 }
 0x33c   :  { %847 = vperm.xlu1 %1035, %v833_v54  }
 0x33d   :  { %v1049_v56 = vpop.eup %1048 }
 0x33e   :  { %v826_v58 = vmul.f32 %v1049_v56, %v818_v46  ;;  %v1051_v59 = vpop.eup %1050 }
 0x33f   :  { %v432_v60 = vmul.f32 %v1051_v59, %v424_v44 }
 0x340   :  { %v830_v45 = vsub.f32 2.0, %v826_v58 }
 0x341   :  { %v436_v63 = vsub.f32 2.0, %v432_v60 }
 0x342   :  { %v834_v62 = vmul.f32 %v1049_v56, %v830_v45 }
 0x343   :  { %v440_v1 = vmul.f32 %v1051_v59, %v436_v63 }
 0x344   :  { %445 = vperm.xlu1 %1035, %v439_v61   ;;  %852 = vperm.xlu2 %1033, %v834_v62  }
 0x34c   :  { %450 = vperm.xlu2 %1033, %v440_v1  }
 0x354   :  { %869 = vrot.lane.b32.xlu2 %v465_v5, %s1055_s3 }
 0x386   :  { %v838_v8 = vpop.permute.xlu2 %837 }
 0x398   :  { %v795_v6 = vpop.f32.mrf.mxu1 }
 0x399   :  { %v807_v7 = vmul.f32 %v795_v6, %v386_v31 }
 0x39b   :  { %v855_v9 = vmul.f32 %v838_v8, %v807_v7 }
 0x39d   :  { %861 = vrot.lane.b32.xlu0 %v855_v9, %s1052_s21 }
 0x39e   :  { %v853_v23 = vpop.permute.xlu2 %852 }
 0x3a0   :  { %v798_v12 = vpop.f32.mrf.mxu1 }
 0x3a1   :  { %v808_v15 = vmul.f32 %v798_v12, %v391_v0 }
 0x3a5   :  { %871 = vrot.lane.b32.xlu0 %v466_v14, %s1055_s3 }
 0x3a6   :  { %v843_v16 = vpop.permute.xlu1 %842  ;;  %v451_v55 = vpop.permute.xlu2 %450 }
 0x3a7   :  { %v856_v52 = vmul.f32 %v843_v16, %v808_v15  ;;  %v464_v30 = vmul.f32 %v451_v55, %v404_v29 }
 0x3a8   :  { %v801_v17 = vpop.f32.mrf.mxu1 }
 0x3a9   :  { %863 = vrot.lane.b32.xlu1 %v856_v52, %s1052_s21  ;;  %v809_v18 = vmul.f32 %v801_v17, %v396_v2 }
 0x3ae   :  { %v848_v19 = vpop.permute.xlu1 %847  ;;  %v870_v28 = vpop.permute.xlu2 %869 }
 0x3af   :  { %v857_v20 = vmul.f32 %v848_v19, %v809_v18 }
 0x3b0   :  { %v804_v21 = vpop.f32.mrf.mxu1 }
 0x3b1   :  { %v810_v22 = vmul.f32 %v804_v21, %v401_v10  ;;  %877 = vrot.lane.b32.xlu1 %v857_v20, %s1056_s12 }
 0x3b3   :  { %v858_v24 = vmul.f32 %v853_v23, %v810_v22 }
 0x3b5   :  { %879 = vrot.lane.b32.xlu2 %v858_v24, %s1056_s12 }
 0x3b6   :  { %v446_v27 = vpop.permute.xlu1 %445 }
 0x3b7   :  { %v463_v39 = vmul.f32 %v446_v27, %v403_v33 }
 0x40f   :  { %v862_v26 = vpop.permute.xlu0 %861  ;;  %v880_v37 = vpop.permute.xlu2 %879 }
 0x410   :  { %v884_v25 = vsel %vm883_vm2, %v463_v39, %v862_v26 }
 0x411   :  { %v887_v41 = vsel %vm886_vm4, %v884_v25, %v870_v28 }
 0x417   :  { %v872_v35 = vpop.permute.xlu0 %871 }
 0x41b   :  { %v864_v32 = vpop.permute.xlu1 %863 }
 0x41c   :  { %v885_v36 = vsel %vm883_vm2, %v464_v30, %v864_v32 }
 0x41d   :  { %v888_v38 = vsel %vm886_vm4, %v885_v36, %v872_v35 }
 0x41e   :  { %v891_v40 = vsel %vm889_vm3, %v888_v38, %v880_v37 }
 0x41f   :  { %893 = vst [vmem:[%s1524_s5 + $0x8] sm:$0xff] %v891_v40 }
 0x423   :  { %v878_v50 = vpop.permute.xlu1 %877 }
 0x424   :  { %v890_v42 = vsel %vm889_vm3, %v887_v41, %v878_v50 }
 0x425   :  { %892 = vst [vmem:[%s1524_s5] sm:$0xff] %v890_v42 }

</bundles_post_ra>
